<compile_context>
chip_gen: v7x
topology: tpu7x:2x2x1
jax: 0.10.0
libtpu: 0.0.40
codegen_flags: <defaults>
</compile_context>

<pallas_src>
import math

import jax
import jax.numpy as jnp
from jax.experimental import pallas as pl
from jax.experimental.pallas import tpu as pltpu


def _round_up(x, m):
    return ((x + m - 1) // m) * m


def _ae_kernel(x_ref, w1_ref, b1_ref, w23_ref, b23_ref, w4_ref, b4_ref,
               out_ref):
    """Fused MLP: fc1 -> tanh -> (fc2;fc3 folded) -> tanh -> fc4 -> sigmoid."""
    x = x_ref[...]                                              # (TB, D) f32

    h = jnp.tanh(jnp.dot(x, w1_ref[...],
                         preferred_element_type=jnp.float32) + b1_ref[...])

    # fc2 -> fc3 has no nonlinearity between them (dropout is identity in
    # eval), so W23 = W2 @ W3 / b23 = b2 @ W3 + b3 are precomputed outside.
    h2 = jnp.tanh(jnp.dot(h, w23_ref[...],
                          preferred_element_type=jnp.float32) + b23_ref[...])

    logits = jnp.dot(h2, w4_ref[...],
                     preferred_element_type=jnp.float32) + b4_ref[...]

    # sigmoid(x) == 0.5 * (tanh(0.5 * x) + 1): single EUP op instead of
    # exp + reciprocal on the widest tensor.
    out_ref[...] = 0.5 * (jnp.tanh(0.5 * logits) + 1.0)


def ae_dropout_forward(x, params, *, batch_tile=512):
    """x: (B, S, F) float32.  Returns the reconstruction with the same shape."""
    B, S, F = x.shape
    D = S * F
    w1, b1, w2, b2, w3, b3, w4, b4 = params
    h_dim = w1.shape[1]

    # ---- fold fc2/fc3 into a single (h_dim, h_dim) matmul (exact) ----------
    w23 = w2 @ w3                      # (h_dim, h_dim)
    b23 = b2 @ w3 + b3                 # (1, h_dim)

    # ---- pad hidden dim to a lane-dense multiple of 128 (exact: zeros) -----
    Hp = _round_up(h_dim, 128)
    if Hp != h_dim:
        w1p = jnp.pad(w1, ((0, 0), (0, Hp - h_dim)))
        b1p = jnp.pad(b1, ((0, 0), (0, Hp - h_dim)))
        w23p = jnp.pad(w23, ((0, Hp - h_dim), (0, Hp - h_dim)))
        b23p = jnp.pad(b23, ((0, 0), (0, Hp - h_dim)))
        w4p = jnp.pad(w4, ((0, Hp - h_dim), (0, 0)))
    else:
        w1p, b1p, w23p, b23p, w4p = w1, b1, w23, b23, w4

    # ---- batch tiling: big M tiles, but keep >=2 grid steps when possible
    #      (v7x dual TensorCore via the "parallel" grid axis). Sublane-align
    #      the tile to 8 and zero-pad the batch to a multiple of the tile. ----
    tb = min(batch_tile, _round_up(max(-(-B // 2), 8), 8))
    B_pad = _round_up(B, tb)
    x2d = x.reshape(B, D)
    if B_pad != B:
        x2d = jnp.pad(x2d, ((0, B_pad - B), (0, 0)))
    grid = (B_pad // tb,)

    # Weight/bias blocks are grid-invariant (constant index_map) -> resident
    # in VMEM across grid steps; only the x / out tiles stream through HBM.
    full = lambda shape: pl.BlockSpec(shape, lambda i: (0, 0))

    out2d = pl.pallas_call(
        _ae_kernel,
        out_shape=jax.ShapeDtypeStruct((B_pad, D), jnp.float32),
        grid_spec=pltpu.PrefetchScalarGridSpec(
            num_scalar_prefetch=0,
            grid=grid,
            in_specs=[
                pl.BlockSpec((tb, D), lambda i: (i, 0)),   # x tile (streams)
                full((D, Hp)), full((1, Hp)),              # fc1
                full((Hp, Hp)), full((1, Hp)),             # fc2 @ fc3 folded
                full((Hp, D)), full((1, D)),               # fc4
            ],
            out_specs=pl.BlockSpec((tb, D), lambda i: (i, 0)),
        ),
        compiler_params=pltpu.CompilerParams(
            dimension_semantics=("parallel",)),
        # VMEM use at tb=512, D=128, Hp=128: ~1 MiB of streaming tiles plus
        # ~0.2 MiB of resident weights -> far below every generation's limit,
        # so no explicit vmem_limit_bytes is needed.
    )(x2d, w1p, b1p, w23p, b23p, w4p, b4)

    return out2d[:B].reshape(B, S, F)


def init_params(key, D, h_dim, z_dim):
    """Deterministic init mirroring the module's xavier_normal(gain=sqrt(2))
    for weights; biases use PyTorch Linear's default uniform range."""
    def xavier_normal_T(k, fan_in, fan_out):
        # PyTorch weight is (out, in); build (in, out) directly with the same
        # distribution (std depends only on fan_in + fan_out).
        std = math.sqrt(2.0) * math.sqrt(2.0 / (fan_in + fan_out))
        return std * jax.random.normal(k, (fan_in, fan_out), jnp.float32)

    def bias(k, fan_in, fan_out):
        bound = 1.0 / math.sqrt(fan_in)
        return jax.random.uniform(k, (1, fan_out), jnp.float32,
                                  minval=-bound, maxval=bound)

    ks = jax.random.split(key, 8)
    w1 = xavier_normal_T(ks[0], D, h_dim);     b1 = bias(ks[1], D, h_dim)
    w2 = xavier_normal_T(ks[2], h_dim, z_dim); b2 = bias(ks[3], h_dim, z_dim)
    w3 = xavier_normal_T(ks[4], z_dim, h_dim); b3 = bias(ks[5], z_dim, h_dim)
    w4 = xavier_normal_T(ks[6], h_dim, D);     b4 = bias(ks[7], h_dim, D)
    return (w1, b1, w2, b2, w3, b3, w4, b4)


def _reference_forward(x, params):
    """Pure-JAX reference of the original module (eval-mode dropout == id),
    with the un-folded fc1..fc4 and true sigmoid."""
    B, S, F = x.shape
    w1, b1, w2, b2, w3, b3, w4, b4 = params
    h = jnp.tanh(x.reshape(B, S * F) @ w1 + b1)
    z = h @ w2 + b2
    h2 = jnp.tanh(z @ w3 + b3)
    r = jax.nn.sigmoid(h2 @ w4 + b4)
    return r.reshape(B, S, F)


if __name__ == "__main__":
    # shape = (B, S, F): batch=13 (non-multiple, exercises the padded last
    # tile), 8 events x 16 features -> D = 128.
    B, S, F = 13, 8, 16
    D = S * F
    h_dim, z_dim = 64, 32

    key = jax.random.PRNGKey(0)
    kx, kp = jax.random.split(key)
    x = jax.random.uniform(kx, (B, S, F), jnp.float32)   # event-log-like input
    params = init_params(kp, D, h_dim, z_dim)

    out = ae_dropout_forward(x, params)
    out = jax.block_until_ready(out)

    ref = _reference_forward(x, params)
    assert out.shape == x.shape and out.dtype == jnp.float32
    # Relaxed tolerance: fc2/fc3 folding and sigmoid-as-tanh change f32
    # rounding at the ~1e-6 level but are mathematically identical.
    assert jnp.allclose(out, ref, atol=5e-5, rtol=1e-4), "mismatch vs reference"

    print("KERNEL_OK")
</pallas_src>

<mosaic_0001>
module attributes {stable_mosaic.version = 11 : i64} {
  func.func @_ae_kernel(%arg0: i32, %arg1: memref<8x128xf32, #tpu.memory_space<vmem>>, %arg2: memref<128x128xf32, #tpu.memory_space<vmem>>, %arg3: memref<1x128xf32, #tpu.memory_space<vmem>>, %arg4: memref<128x128xf32, #tpu.memory_space<vmem>>, %arg5: memref<1x128xf32, #tpu.memory_space<vmem>>, %arg6: memref<128x128xf32, #tpu.memory_space<vmem>>, %arg7: memref<1x128xf32, #tpu.memory_space<vmem>>, %arg8: memref<8x128xf32, #tpu.memory_space<vmem>>) attributes {dimension_semantics = [#tpu.dimension_semantics<parallel>], iteration_bounds = array<i64: 2>, scalar_prefetch = 0 : i64, scratch_operands = 0 : i64, tpu.core_type = #tpu.core_type<tc>, window_params = [{transform_indices = @transform_0, window_bounds = array<i64: 8, 128>}, {pipeline_mode = #tpu.pipeline_mode<synchronous>, transform_indices = @transform_1, window_bounds = array<i64: 128, 128>}, {pipeline_mode = #tpu.pipeline_mode<synchronous>, transform_indices = @transform_2, window_bounds = array<i64: 1, 128>}, {pipeline_mode = #tpu.pipeline_mode<synchronous>, transform_indices = @transform_3, window_bounds = array<i64: 128, 128>}, {pipeline_mode = #tpu.pipeline_mode<synchronous>, transform_indices = @transform_4, window_bounds = array<i64: 1, 128>}, {pipeline_mode = #tpu.pipeline_mode<synchronous>, transform_indices = @transform_5, window_bounds = array<i64: 128, 128>}, {pipeline_mode = #tpu.pipeline_mode<synchronous>, transform_indices = @transform_6, window_bounds = array<i64: 1, 128>}, {transform_indices = @transform_7, window_bounds = array<i64: 8, 128>}]} {
    %c0 = arith.constant 0 : index
    %c0_0 = arith.constant 0 : index
    %0 = vector.load %arg1[%c0, %c0_0] : memref<8x128xf32, #tpu.memory_space<vmem>>, vector<8x128xf32>
    %c0_1 = arith.constant 0 : index
    %c0_2 = arith.constant 0 : index
    %1 = vector.load %arg2[%c0_1, %c0_2] : memref<128x128xf32, #tpu.memory_space<vmem>>, vector<128x128xf32>
    %cst = arith.constant dense<0.000000e+00> : vector<8x128xf32>
    %2 = tpu.matmul %0, %1, %cst {dimension_numbers = #tpu.dot_dimension_numbers<[1], [0], [0], [1], [0, 0, 1, 1], [], []>} : vector<8x128xf32>, vector<128x128xf32>, vector<8x128xf32> -> vector<8x128xf32>
    %c0_3 = arith.constant 0 : index
    %c0_4 = arith.constant 0 : index
    %3 = vector.load %arg3[%c0_3, %c0_4] : memref<1x128xf32, #tpu.memory_space<vmem>>, vector<1x128xf32>
    %4 = vector.broadcast %3 : vector<1x128xf32> to vector<8x128xf32>
    %5 = arith.addf %2, %4 : vector<8x128xf32>
    %6 = math.tanh %5 : vector<8x128xf32>
    %c0_5 = arith.constant 0 : index
    %c0_6 = arith.constant 0 : index
    %7 = vector.load %arg4[%c0_5, %c0_6] : memref<128x128xf32, #tpu.memory_space<vmem>>, vector<128x128xf32>
    %cst_7 = arith.constant dense<0.000000e+00> : vector<8x128xf32>
    %8 = tpu.matmul %6, %7, %cst_7 {dimension_numbers = #tpu.dot_dimension_numbers<[1], [0], [0], [1], [0, 0, 1, 1], [], []>} : vector<8x128xf32>, vector<128x128xf32>, vector<8x128xf32> -> vector<8x128xf32>
    %c0_8 = arith.constant 0 : index
    %c0_9 = arith.constant 0 : index
    %9 = vector.load %arg5[%c0_8, %c0_9] : memref<1x128xf32, #tpu.memory_space<vmem>>, vector<1x128xf32>
    %10 = vector.broadcast %9 : vector<1x128xf32> to vector<8x128xf32>
    %11 = arith.addf %8, %10 : vector<8x128xf32>
    %12 = math.tanh %11 : vector<8x128xf32>
    %c0_10 = arith.constant 0 : index
    %c0_11 = arith.constant 0 : index
    %13 = vector.load %arg6[%c0_10, %c0_11] : memref<128x128xf32, #tpu.memory_space<vmem>>, vector<128x128xf32>
    %cst_12 = arith.constant dense<0.000000e+00> : vector<8x128xf32>
    %14 = tpu.matmul %12, %13, %cst_12 {dimension_numbers = #tpu.dot_dimension_numbers<[1], [0], [0], [1], [0, 0, 1, 1], [], []>} : vector<8x128xf32>, vector<128x128xf32>, vector<8x128xf32> -> vector<8x128xf32>
    %c0_13 = arith.constant 0 : index
    %c0_14 = arith.constant 0 : index
    %15 = vector.load %arg7[%c0_13, %c0_14] : memref<1x128xf32, #tpu.memory_space<vmem>>, vector<1x128xf32>
    %16 = vector.broadcast %15 : vector<1x128xf32> to vector<8x128xf32>
    %17 = arith.addf %14, %16 : vector<8x128xf32>
    %cst_15 = arith.constant 5.000000e-01 : f32
    %18 = vector.broadcast %cst_15 : f32 to vector<8x128xf32>
    %19 = arith.mulf %18, %17 : vector<8x128xf32>
    %20 = math.tanh %19 : vector<8x128xf32>
    %cst_16 = arith.constant 1.000000e+00 : f32
    %21 = vector.broadcast %cst_16 : f32 to vector<8x128xf32>
    %22 = arith.addf %20, %21 : vector<8x128xf32>
    %cst_17 = arith.constant 5.000000e-01 : f32
    %23 = vector.broadcast %cst_17 : f32 to vector<8x128xf32>
    %24 = arith.mulf %23, %22 : vector<8x128xf32>
    %c0_18 = arith.constant 0 : index
    %c0_19 = arith.constant 0 : index
    %25 = vector.load %arg8[%c0_18, %c0_19] : memref<8x128xf32, #tpu.memory_space<vmem>>, vector<8x128xf32>
    tpu.vector_store %arg8[%c0_18, %c0_19], %24 {strides = array<i32>} : memref<8x128xf32, #tpu.memory_space<vmem>>, vector<8x128xf32>,
    return
  }
  func.func @transform_0(%arg0: i32) -> (i32, i32) {
    %c0_i32 = arith.constant 0 : i32
    %c0_i32_0 = arith.constant 0 : i32
    return %arg0, %c0_i32 : i32, i32
  }
  func.func @transform_1(%arg0: i32) -> (i32, i32) {
    %c0_i32 = arith.constant 0 : i32
    %c0_i32_0 = arith.constant 0 : i32
    %c0_i32_1 = arith.constant 0 : i32
    return %c0_i32, %c0_i32_0 : i32, i32
  }
  func.func @transform_2(%arg0: i32) -> (i32, i32) {
    %c0_i32 = arith.constant 0 : i32
    %c0_i32_0 = arith.constant 0 : i32
    %c0_i32_1 = arith.constant 0 : i32
    return %c0_i32, %c0_i32_0 : i32, i32
  }
  func.func @transform_3(%arg0: i32) -> (i32, i32) {
    %c0_i32 = arith.constant 0 : i32
    %c0_i32_0 = arith.constant 0 : i32
    %c0_i32_1 = arith.constant 0 : i32
    return %c0_i32, %c0_i32_0 : i32, i32
  }
  func.func @transform_4(%arg0: i32) -> (i32, i32) {
    %c0_i32 = arith.constant 0 : i32
    %c0_i32_0 = arith.constant 0 : i32
    %c0_i32_1 = arith.constant 0 : i32
    return %c0_i32, %c0_i32_0 : i32, i32
  }
  func.func @transform_5(%arg0: i32) -> (i32, i32) {
    %c0_i32 = arith.constant 0 : i32
    %c0_i32_0 = arith.constant 0 : i32
    %c0_i32_1 = arith.constant 0 : i32
    return %c0_i32, %c0_i32_0 : i32, i32
  }
  func.func @transform_6(%arg0: i32) -> (i32, i32) {
    %c0_i32 = arith.constant 0 : i32
    %c0_i32_0 = arith.constant 0 : i32
    %c0_i32_1 = arith.constant 0 : i32
    return %c0_i32, %c0_i32_0 : i32, i32
  }
  func.func @transform_7(%arg0: i32) -> (i32, i32) {
    %c0_i32 = arith.constant 0 : i32
    %c0_i32_0 = arith.constant 0 : i32
    return %arg0, %c0_i32 : i32, i32
  }
}

</mosaic_0001>

<bundles_post_ra>
// kernel: tpu_custom_call.1
= control target key start
LH: loop header
LB: loop body
LE: loop exit
PB: predicated region body
PF: predicated region fallthrough
CT: control target
= control target key end

     0   :  { %12 = vsyncpa [#allocation3], 0  ;;  %s1624_s0 = inlined_call_operand.hbm [shape: f32[16,128], index: 0, kind: input, shape index: {}]   ;;  %s1625_s1 = inlined_call_operand.hbm [shape: f32[128,128], index: 1, kind: input, shape index: {}]   ;;  %s1626_s2 = inlined_call_operand.vmem [shape: f32[1,128], index: 2, kind: input, shape index: {}]   ;;  %s1627_s3 = inlined_call_operand.hbm [shape: f32[128,128], index: 3, kind: input, shape index: {}]   ;;  %s1628_s4 = inlined_call_operand.vmem [shape: f32[1,128], index: 4, kind: input, shape index: {}]   ;;  %s1629_s5 = inlined_call_operand.hbm [shape: f32[128,128], index: 5, kind: input, shape index: {}]   ;;  %s1630_s6 = inlined_call_operand.vmem [shape: f32[1,128], index: 6, kind: input, shape index: {}]   ;;  %s1631_s7 = inlined_call_operand.hbm [shape: f32[16,128], index: 7, kind: output, shape index: {}]  }
   0x1   :  { %14 = vsyncpa [#allocation3 + $0x1], 0 }
   0x2   :  { %15 = vsyncpa [#allocation6], 0 }
   0x3   :  { %16 = vsyncpa [#allocation9], 0 }
   0x4   :  { %17 = vsyncpa [#allocation4], 0 }
   0x5   :  { %19 = vsyncpa [#allocation4 + $0x1], 0  ;;  %s1315_s24 = smov 0   ;;  %s1317_s25 = smov 0  }
   0x6   :  { %s1319_s26 = smov 0   ;;  %s1321_s27 = smov 0  }
   0x7 LB: > { %s1336_s28 = sadd.s32 4294967295, %s1263_s27   ;;  %s738_s29 = sadd.s32 4294967294, %s1263_s27   ;;  %s1263_s27 = sphi %s1321_s27, %s1657_s27   ;;  %s1259_s26 = sphi %s1319_s26, %s1656_s26   ;;  %s1255_s25 = sphi %s1317_s25, %s1655_s25   ;;  %s1251_s24 = sphi %s1315_s24, %s1654_s24  }
   0x8   : > { %p45_p0 = scmp.ne.s32.totalorder %s1255_s25, %s1251_s24  ;;  %p1632_p1 = scmp.eq.s32.totalorder %s1336_s28, 0 }
   0x9   : > { %p201_p3 = scmp.eq.s32.totalorder %s738_s29, 1  ;;  %p739_p5 = scmp.ge.s32.totalorder %s1263_s27, 1 }
   0xa   : > { %p1345_p4 = por %p1632_p1, %p45_p0  ;;  %p208_p7 = scmp.lt.s32.totalorder %s1263_s27, 3 }
   0xb   : > { %p1350_p6 = por %p201_p3, %p45_p0  ;;  %s1265_s10 = smov [#allocation5]  }
   0xc   : > { %s1636_s30 = scalar_select %p1345_p4, 1, 0 }
   0xd   : > { %s1637_s8 = scalar_select %p1350_p6, 1, 0 }
   0xe   : > { %p1355_p8 = pnand %p739_p5, %p208_p7  ;;  %s220_s11 = sshll.u32 %s1265_s10, 4  ;;  %s1359_s11 = int_to_ptr.vmem [resolvable:$true] %s220_s11 }
   0xf   : > { %1638 = sst [smem:[#allocation15_spill]] %s1637_s8  ;;  %s1266_s13 = smov [#allocation7]  }
  0x10   : > { %s1639_s9 = scalar_select %p1355_p8, 1, 0 }
  0x11   : > { %p1003_p9 = pneg %p1355_p8  ;;  %s236_s14 = sshll.u32 %s1266_s13, 4  ;;  %s1370_s14 = int_to_ptr.vmem [resolvable:$true] %s236_s14 }
  0x12   : > { %s1267_s15 = smov [#allocation8]   ;;  %s1075_s19 = scalar_lea.hbm %s1625_s1, 2048 }
  0x13   : > { %p1366_p11 = pnand %p1003_p9, %p1632_p1  ;;  %s1372_s16 = sshll.u32 %s1267_s15, 4  ;;  %s253_s16 = int_to_ptr.vmem [resolvable:$true] %s1372_s16 }
  0x14   : > { %p1076_p12 = scmp.ne.s32.totalorder %s1625_s1, %s1075_s19  ;;  %p1082_p5 = scmp.lt.u32.totalorder %s1075_s19, %s1625_s1 }
  0x15   : > { %p1382_p13 = pneg %p1366_p11 }
  0x17   : > { %p1078_p0 = pnand %p1382_p13, %p1076_p12 }
  0x19   : > { %p1079_p3 = pneg %p1078_p0 }
  0x1b   : > { %p1084_p7 = pnand %p1082_p5, %p1079_p3 }
  0x1d   : > { %1087 = shalt.err (!%p1084_p7)
}
  0x1e   : > { %s1088_s10 = scalar_lea.vmem %s1359_s11, 2048  ;;  %p1096_p2 = scmp.lt.s32.totalorder %s1359_s11, %s1359_s11 }
  0x1f   : > { %p1089_p9 = scmp.ne.s32.totalorder %s1359_s11, %s1088_s10  ;;  %p1097_p6 = scmp.lt.s32.totalorder %s1088_s10, %s1088_s10 }
  0x21   : > { %p1091_p10 = pnand %p1089_p9, %p1382_p13  ;;  %p1098_p12 = por %p1097_p6, %p1096_p2 }
  0x23   : > { %p1092_p1 = pneg %p1091_p10 }
  0x25   : > { %p1099_p0 = pnand %p1098_p12, %p1092_p1 }
  0x27   : > { %1102 = shalt.err (!%p1099_p0)
}
  0x28   : > { %s1268_s13 = smov 128   ;;  %s1269_s15 = smov 8  }
  0x29   : > { %1006 = dma.hbm_to_vmem [thread:$0]  (!%p1366_p11), %s1625_s1, 2048, %s1359_s11, [#allocation6], %s1268_s13, %s1268_s13, %s1269_s15  }
  0x2a   : > { %s1103_s21 = scalar_lea.hbm %s1627_s3, 2048 }
  0x2b   : > { %p1104_p1 = scmp.ne.s32.totalorder %s1627_s3, %s1103_s21  ;;  %p1110_p10 = scmp.lt.u32.totalorder %s1103_s21, %s1627_s3 }
  0x2d   : > { %p1106_p2 = pnand %p1104_p1, %p1382_p13 }
  0x2f   : > { %p1107_p6 = pneg %p1106_p2 }
  0x31   : > { %p1112_p3 = pnand %p1110_p10, %p1107_p6 }
  0x33   : > { %1115 = shalt.err (!%p1112_p3)
}
  0x34   : > { %s1116_s11 = scalar_lea.vmem %s1370_s14, 2048  ;;  %p1124_p12 = scmp.lt.s32.totalorder %s1370_s14, %s1370_s14 }
  0x35   : > { %p1117_p5 = scmp.ne.s32.totalorder %s1370_s14, %s1116_s11  ;;  %p1125_p0 = scmp.lt.s32.totalorder %s1116_s11, %s1116_s11 }
  0x37   : > { %p1119_p7 = pnand %p1117_p5, %p1382_p13  ;;  %p1126_p1 = por %p1125_p0, %p1124_p12 }
  0x39   : > { %p1120_p9 = pneg %p1119_p7 }
  0x3b   : > { %p1127_p2 = pnand %p1126_p1, %p1120_p9 }
  0x3d   : > { %1130 = shalt.err (!%p1127_p2)
}
  0x3e   : > { %1009 = dma.hbm_to_vmem [thread:$0]  (!%p1366_p11), %s1627_s3, 2048, %s1370_s14, [#allocation6], %s1268_s13, %s1268_s13, %s1269_s15  }
  0x3f   : > { %s1131_s20 = scalar_lea.hbm %s1629_s5, 2048 }
  0x40   : > { %p1132_p6 = scmp.ne.s32.totalorder %s1629_s5, %s1131_s20  ;;  %p1138_p5 = scmp.lt.u32.totalorder %s1131_s20, %s1629_s5 }
  0x42   : > { %p1134_p10 = pnand %p1132_p6, %p1382_p13 }
  0x44   : > { %p1135_p3 = pneg %p1134_p10 }
  0x46   : > { %p1140_p7 = pnand %p1138_p5, %p1135_p3 }
  0x48   : > { %1143 = shalt.err (!%p1140_p7)
}
  0x49   : > { %s1144_s11 = scalar_lea.vmem %s253_s16, 2048  ;;  %p1152_p1 = scmp.lt.s32.totalorder %s253_s16, %s253_s16 }
  0x4a   : > { %p1145_p9 = scmp.ne.s32.totalorder %s253_s16, %s1144_s11  ;;  %p1153_p2 = scmp.lt.s32.totalorder %s1144_s11, %s1144_s11 }
  0x4c   : > { %p1147_p12 = pnand %p1145_p9, %p1382_p13  ;;  %p1154_p4 = por %p1153_p2, %p1152_p1 }
  0x4e   : > { %p1148_p0 = pneg %p1147_p12 }
  0x50   : > { %p1155_p8 = pnand %p1154_p4, %p1148_p0 }
  0x52   : > { %1158 = shalt.err (!%p1155_p8)
}
  0x53   : > { %1012 = dma.hbm_to_vmem [thread:$0]  (!%p1366_p11), %s1629_s5, 2048, %s253_s16, [#allocation9], %s1268_s13, %s1268_s13, %s1269_s15  }
  0x54   : > { %s1455_s22 = sadd.s32 1, %s1263_s27   ;;  %s32_s17 = sadd.s32 1, %s1259_s26 }
  0x55   : > { %s29_s12 = ssub.s32 %s1263_s27, %s1455_s22  ;;  %p39_p8 = scmp.ne.s32.totalorder %s1259_s26, %s1255_s25 }
  0x56   : > { %p30_p4 = scmp.eq.s32.totalorder %s29_s12, 0  ;;  %p40_p13 = scmp.eq.s32.totalorder %s1263_s27, 0 }
  0x57   : > { %p1024_p6 = scmp.lt.s32.totalorder %s1263_s27, 2  ;;  %p1642_p3 = scmp.eq.s32.totalorder %s1336_s28, 1 }
  0x58   : > { %s1465_s18 = scalar_select %p30_p4, %s1259_s26, %s32_s17  }
  0x59   : > { %p41_p10 = por %p40_p13, %p39_p8  ;;  %p1469_p5 = por %p1642_p3, %p39_p8 }
  0x5a   : > { %s269_s20 = sand.u32 1, %s1259_s26   ;;  %s745_s21 = sshll.u32 %s1263_s27, 7 }
  0x5b   : > { %s744_s16 = sshll.u32 %s269_s20, 3  ;;  %s1478_s23 = scalar_lea.hbm %s1624_s0, %s745_s21 }
  0x5c   : > { %s273_s29 = scalar_lea.vmem [#allocation2], %s744_s16  ;;  %p1480_p11 = pnand %p1024_p6, %p41_p10 }
  0x5d   : > { %s280_s10 = sshll.u32 %s273_s29, 4  ;;  %s270_s14 = scalar_lea.sflag [#allocation3], %s269_s20  ;;  %s1484_s10 = int_to_ptr.vmem [resolvable:$true] %s280_s10 }
  0x5e   : > { %s1159_s8 = scalar_lea.hbm %s1478_s23, 128  ;;  %p1161_p9 = pneg %p1480_p11 }
  0x5f   : > { %p1160_p7 = scmp.ne.s32.totalorder %s1478_s23, %s1159_s8  ;;  %s1164_s21 = scalar_lea.hbm %s1624_s0, 256 }
  0x60   : > { %p1165_p1 = scmp.lt.u32.totalorder %s1478_s23, %s1624_s0  ;;  %p1166_p2 = scmp.lt.u32.totalorder %s1164_s21, %s1159_s8 }
  0x61   : > { %p1162_p12 = pnand %p1161_p9, %p1160_p7  ;;  %p1168_p8 = scmp.lt.u32.totalorder %s1159_s8, %s1478_s23 }
  0x62   : > { %p1167_p4 = por %p1166_p2, %p1165_p1 }
  0x63   : > { %p1163_p0 = pneg %p1162_p12 }
  0x64   : > { %p1169_p13 = por %p1168_p8, %p1167_p4 }
  0x66   : > { %p1170_p6 = pnand %p1169_p13, %p1163_p0 }
  0x68   : > { %1173 = shalt.err (!%p1170_p6)
}
  0x69   : > { %s1174_s20 = scalar_lea.vmem %s1484_s10, 128  ;;  %s1270_s15 = smov [#allocation2]  }
  0x6a   : > { %p1175_p10 = scmp.ne.s32.totalorder %s1484_s10, %s1174_s20  ;;  %s1179_s29 = sshll.u32 %s1270_s15, 4  ;;  %s1180_s29 = int_to_ptr.vmem [resolvable:$false] %s1179_s29 }
  0x6b   : > { %s1181_s12 = scalar_lea.vmem %s1180_s29, 256  ;;  %p1182_p12 = scmp.lt.s32.totalorder %s1484_s10, %s1180_s29 }
  0x6c   : > { %p1177_p3 = pnand %p1175_p10, %p1161_p9  ;;  %p1183_p1 = scmp.lt.s32.totalorder %s1181_s12, %s1174_s20 }
  0x6e   : > { %p1178_p7 = pneg %p1177_p3  ;;  %p1184_p2 = por %p1183_p1, %p1182_p12 }
  0x70   : > { %p1185_p4 = pnand %p1184_p2, %p1178_p7 }
  0x72   : > { %1188 = shalt.err (!%p1185_p4)
}
  0x73   : > { %1016 = dma.hbm_to_vmem [thread:$0]  (!%p1480_p11), %s1478_s23, 128, %s1484_s10, %s270_s14  }
  0x74   : > { %p1645_p0 = scmp.ne.s32.totalorder %s1639_s9, 0 }
  0x75   : > { %s1514_s8 = sand.u32 (!%p1645_p0), 1, %s1255_s25   ;;  %p1646_p9 = scmp.ne.s32.totalorder (!%p1645_p0), %s1636_s30, 0 }
  0x76   : > { %289 = sbr.rel (%p1645_p0) target bundleno = 863 (0x35f), region = 48  ;;  %s747_s17 = sshll.u32 (!%p1645_p0), %s1514_s8, 3 }
  0x77   : > { %s292_s21 = scalar_lea.sflag (!%p1645_p0), [#allocation3], %s1514_s8  ;;  %s1520_s16 = scalar_lea.vmem (!%p1645_p0), [#allocation2], %s747_s17 }
  0x7d   : > { %1234 = dma.done.wait (%p1646_p9), %s292_s21, 128  }
  0x7e   : > { %1236 = vsyncadd (%p1646_p9), %s292_s21, 4294967168  ;;  %p1647_p11 = scmp.eq.s32.totalorder %s1336_s28, 0 }
  0x80   : > { %1238 = dma.done.wait (%p1647_p11), [#allocation6], 4096   ;;  %p1648_p8 = pmov %p1647_p11 }
  0x82   : > { %1240 = vsyncadd (%p1648_p8), [#allocation6], 4294963200  ;;  %p1649_p13 = pmov %p1648_p8 }
  0x83   : > { %p1650_p6 = pmov %p1648_p8 }
  0x84   : > { %1242 = dma.done.wait (%p1649_p13), [#allocation9], 2048  }
  0x85   : > { %1244 = vsyncadd (%p1650_p6), [#allocation9], 4294965248  ;;  %v1271_v0 = vmov 0.0|0.0   ;;  %vm1272_vm0 = vmmov 0   ;;  %v1273_v1 = vmov 0.0   ;;  %v339_v2 = vld [vmem:[#allocation5] sm:$0xff] }
  0x86   : > { %915 = vmatprep.subr.bf16.mxu0 %v1271_v0  ;;  %842 = vmatprep.mubr.msk.f32.mxu0 %vm1272_vm0, %v1273_v1  ;;  %v340_v3 = vld [vmem:[#allocation5 + $0x8] sm:$0xff]  ;;  %v341_v4 = vld [vmem:[#allocation5 + $0x10] sm:$0xff]  ;;  %v342_v6 = vld [vmem:[#allocation5 + $0x18] sm:$0xff]  ;;  %s756_s13 = sshll.u32 %s1336_s28, 7  ;;  %s337_s20 = scalar_lea.vmem [#allocation10], %s747_s17 }
  0x87   : > { %939 = vmatprep.subr.bf16.mxu1 %v1271_v0  ;;  %877 = vmatprep.mubr.msk.f32.mxu1 %vm1272_vm0, %v1273_v1  ;;  %v916_v5 = vpack.c.bf16 %v340_v3, %v339_v2  ;;  %v919_v7 = vpack.c.bf16 %v342_v6, %v341_v4  ;;  %v343_v8 = vld [vmem:[#allocation5 + $0x20] sm:$0xff]  ;;  %v344_v9 = vld [vmem:[#allocation5 + $0x28] sm:$0xff]  ;;  %v435_v12 = vld [vmem:[#allocation7 + $0x10] sm:$0xff]  ;;  %s639_s15 = sshll.u32 %s337_s20, 4  ;;  %s1580_s21 = scalar_lea.hbm %s1631_s7, %s756_s13  ;;  %s1582_s15 = int_to_ptr.vmem [resolvable:$true] %s639_s15 }
  0x88   : > { %v433_v10 = vld [vmem:[#allocation7] sm:$0xff]  ;;  %v434_v11 = vld [vmem:[#allocation7 + $0x8] sm:$0xff]  ;;  %v436_v13 = vld [vmem:[#allocation7 + $0x18] sm:$0xff]  ;;  %v922_v14 = vpack.c.bf16 %v344_v9, %v343_v8  ;;  %s1189_s30 = scalar_lea.vmem %s1582_s15, 128  ;;  %s1274_s28 = smov [#allocation10]  }
  0x89   : > { %917 = vmatpush3.bf16.msra.mxu0 %v916_v5  ;;  %v940_v15 = vpack.c.bf16 %v434_v11, %v433_v10  ;;  %v345_v16 = vld [vmem:[#allocation5 + $0x30] sm:$0xff]  ;;  %v346_v17 = vld [vmem:[#allocation5 + $0x38] sm:$0xff]  ;;  %v943_v18 = vpack.c.bf16 %v436_v13, %v435_v12  ;;  %v437_v19 = vld [vmem:[#allocation7 + $0x20] sm:$0xff]  ;;  %p1190_p10 = scmp.ne.s32.totalorder %s1582_s15, %s1189_s30  ;;  %s1193_s17 = sshll.u32 %s1274_s28, 4  ;;  %s1194_s17 = int_to_ptr.vmem [resolvable:$false] %s1193_s17 }
  0x8a   : > { %918 = vmatprep.subr.bf16.mxu0 %v1271_v0  ;;  %v438_v20 = vld [vmem:[#allocation7 + $0x28] sm:$0xff]  ;;  %v925_v21 = vpack.c.bf16 %v346_v17, %v345_v16  ;;  %v347_v22 = vld [vmem:[#allocation5 + $0x40] sm:$0xff]  ;;  %v439_v25 = vld [vmem:[#allocation7 + $0x30] sm:$0xff]  ;;  %s1195_s9 = scalar_lea.vmem %s1194_s17, 256  ;;  %p1196_p12 = scmp.lt.s32.totalorder %s1582_s15, %s1194_s17 }
  0x8b   : > { %941 = vmatpush3.bf16.msra.mxu1 %v940_v15  ;;  %v348_v23 = vld [vmem:[#allocation5 + $0x48] sm:$0xff]  ;;  %v946_v24 = vpack.c.bf16 %v438_v20, %v437_v19  ;;  %v440_v26 = vld [vmem:[#allocation7 + $0x38] sm:$0xff]  ;;  %v349_v28 = vld [vmem:[#allocation5 + $0x50] sm:$0xff]  ;;  %p1191_p3 = pnand %p1190_p10, %p1469_p5  ;;  %p1197_p1 = scmp.lt.s32.totalorder %s1195_s9, %s1189_s30 }
  0x8c   : > { %942 = vmatprep.subr.bf16.mxu1 %v1271_v0  ;;  %v928_v27 = vpack.c.bf16 %v348_v23, %v347_v22  ;;  %v350_v29 = vld [vmem:[#allocation5 + $0x58] sm:$0xff]  ;;  %v949_v30 = vpack.c.bf16 %v440_v26, %v439_v25  ;;  %v441_v31 = vld [vmem:[#allocation7 + $0x40] sm:$0xff]  ;;  %v442_v32 = vld [vmem:[#allocation7 + $0x48] sm:$0xff] }
  0x8d   : > { %920 = vmatpush3.bf16.msra.mxu0 %v919_v7  ;;  %v931_v33 = vpack.c.bf16 %v350_v29, %v349_v28  ;;  %v351_v34 = vld [vmem:[#allocation5 + $0x60] sm:$0xff]  ;;  %v352_v35 = vld [vmem:[#allocation5 + $0x68] sm:$0xff]  ;;  %v952_v36 = vpack.c.bf16 %v442_v32, %v441_v31  ;;  %v353_v38 = vld [vmem:[#allocation5 + $0x70] sm:$0xff]  ;;  %p1192_p7 = pneg %p1191_p3  ;;  %p1198_p2 = por %p1197_p1, %p1196_p12 }
  0x8e   : > { %921 = vmatprep.subr.bf16.mxu0 %v1271_v0  ;;  %v934_v37 = vpack.c.bf16 %v352_v35, %v351_v34  ;;  %v354_v39 = vld [vmem:[#allocation5 + $0x78] sm:$0xff]  ;;  %v443_v42 = vld [vmem:[#allocation7 + $0x50] sm:$0xff]  ;;  %v445_v45 = vld [vmem:[#allocation7 + $0x60] sm:$0xff] }
  0x8f   : > { %944 = vmatpush3.bf16.msra.mxu1 %v943_v18  ;;  %v937_v40 = vpack.c.bf16 %v354_v39, %v353_v38  ;;  %v338_v41 = vld [vmem:[%s1520_s16] sm:$0xff]  ;;  %v446_v46 = vld [vmem:[#allocation7 + $0x68] sm:$0xff]  ;;  %v527_v51 = vld [vmem:[#allocation8] sm:$0xff]  ;;  %s626_s16 = scalar_lea.sflag [#allocation4], %s1514_s8  ;;  %p1199_p4 = pnand %p1198_p2, %p1192_p7 }
  0x90   : > { %945 = vmatprep.subr.bf16.mxu1 %v1271_v0  ;;  %v444_v43 = vld [vmem:[#allocation7 + $0x58] sm:$0xff]  ;;  %v958_v47 = vpack.c.bf16 %v446_v46, %v445_v45  ;;  %v447_v48 = vld [vmem:[#allocation7 + $0x70] sm:$0xff]  ;;  %v528_v52 = vld [vmem:[#allocation8 + $0x8] sm:$0xff] }
  0x91   : > { %923 = vmatpush3.bf16.msra.mxu0 %v922_v14  ;;  %v955_v44 = vpack.c.bf16 %v444_v43, %v443_v42  ;;  %v448_v49 = vld [vmem:[#allocation7 + $0x78] sm:$0xff]  ;;  %v529_v53 = vld [vmem:[#allocation8 + $0x10] sm:$0xff]  ;;  %v964_v54 = vpack.c.bf16 %v528_v52, %v527_v51  ;;  %v531_v57 = vld [vmem:[#allocation8 + $0x20] sm:$0xff] }
  0x92   : > { %924 = vmatprep.subr.bf16.mxu0 %v1271_v0  ;;  %v961_v50 = vpack.c.bf16 %v448_v49, %v447_v48  ;;  %v530_v55 = vld [vmem:[#allocation8 + $0x18] sm:$0xff]  ;;  %v532_v58 = vld [vmem:[#allocation8 + $0x28] sm:$0xff]  ;;  %v533_v60 = vld [vmem:[#allocation8 + $0x30] sm:$0xff] }
  0x93   : > { %947 = vmatpush3.bf16.msra.mxu1 %v946_v24  ;;  %v967_v56 = vpack.c.bf16 %v530_v55, %v529_v53  ;;  %v970_v59 = vpack.c.bf16 %v532_v58, %v531_v57  ;;  %v534_v61 = vld [vmem:[#allocation8 + $0x38] sm:$0xff]  ;;  %v535_v63 = vld [vmem:[#allocation8 + $0x40] sm:$0xff]  ;;  %v752_v3 = vld [vmem:[%s1626_s2] ss:$0 sm:$0xff] }
  0x94   : > { %948 = vmatprep.subr.bf16.mxu1 %v1271_v0  ;;  %v973_v62 = vpack.c.bf16 %v534_v61, %v533_v60  ;;  %v537_v8 = vld [vmem:[#allocation8 + $0x50] sm:$0xff]  ;;  %v538_v9 = vld [vmem:[#allocation8 + $0x58] sm:$0xff]  ;;  %v539_v11 = vld [vmem:[#allocation8 + $0x60] sm:$0xff] }
  0x95   : > { %926 = vmatpush3.bf16.msra.mxu0 %v925_v21  ;;  %v979_v10 = vpack.c.bf16 %v538_v9, %v537_v8  ;;  %v540_v12 = vld [vmem:[#allocation8 + $0x68] sm:$0xff]  ;;  %v541_v14 = vld [vmem:[#allocation8 + $0x70] sm:$0xff]  ;;  %v542_v15 = vld [vmem:[#allocation8 + $0x78] sm:$0xff] }
  0x96   : > { %927 = vmatprep.subr.bf16.mxu0 %v1271_v0  ;;  %v982_v13 = vpack.c.bf16 %v540_v12, %v539_v11  ;;  %v985_v16 = vpack.c.bf16 %v542_v15, %v541_v14  ;;  %v753_v17 = vld [vmem:[%s1628_s4] ss:$0 sm:$0xff] }
  0x97   : > { %950 = vmatpush3.bf16.msra.mxu1 %v949_v30  ;;  %v754_v22 = vld [vmem:[%s1630_s6] ss:$0 sm:$0xff] }
  0x98   : > { %951 = vmatprep.subr.bf16.mxu1 %v1271_v0 }
  0x99   : > { %929 = vmatpush3.bf16.msra.mxu0 %v928_v27 }
  0x9a   : > { %930 = vmatprep.subr.bf16.mxu0 %v1271_v0 }
  0x9b   : > { %953 = vmatpush3.bf16.msra.mxu1 %v952_v36 }
  0x9c   : > { %954 = vmatprep.subr.bf16.mxu1 %v1271_v0 }
  0x9d   : > { %932 = vmatpush3.bf16.msra.mxu0 %v931_v33 }
  0x9e   : > { %933 = vmatprep.subr.bf16.mxu0 %v1271_v0 }
  0x9f   : > { %956 = vmatpush3.bf16.msra.mxu1 %v955_v44 }
  0xa0   : > { %957 = vmatprep.subr.bf16.mxu1 %v1271_v0 }
  0xa1   : > { %935 = vmatpush3.bf16.msra.mxu0 %v934_v37 }
  0xa2   : > { %936 = vmatprep.subr.bf16.mxu0 %v1271_v0 }
  0xa3   : > { %959 = vmatpush3.bf16.msra.mxu1 %v958_v47 }
  0xa4   : > { %960 = vmatprep.subr.bf16.mxu1 %v1271_v0 }
  0xa5   : > { %938 = vmatpush3.bf16.msra.mxu0 %v937_v40 }
  0xa6   : > { %963 = vmatprep.subr.bf16.mxu0 %v1271_v0 }
  0xa7   : > { %962 = vmatpush3.bf16.msra.mxu1 %v961_v50 }
  0xa8   : > { %843 = vmatmul.mubr.f32.vlgmr.msra.gmra.mrb[0].mxu0 %v338_v41 }
  0xa9   : > { %912 = vmatprep.mubr.msk.f32.mxu0 %vm1272_vm0, %v1273_v1  ;;  %965 = vmatpush3.bf16.msra.mxu0 %v964_v54  ;;  %v536_v1 = vld [vmem:[#allocation8 + $0x48] sm:$0xff] }
  0xaa   : > { %966 = vmatprep.subr.bf16.mxu0 %v1271_v0  ;;  %v976_v2 = vpack.c.bf16 %v536_v1, %v535_v63 }
  0xad   : > { %968 = vmatpush3.bf16.msra.mxu0 %v967_v56 }
  0xae   : > { %969 = vmatprep.subr.bf16.mxu0 %v1271_v0 }
  0xb1   : > { %971 = vmatpush3.bf16.msra.mxu0 %v970_v59 }
  0xb2   : > { %972 = vmatprep.subr.bf16.mxu0 %v1271_v0 }
  0xb5   : > { %974 = vmatpush3.bf16.msra.mxu0 %v973_v62 }
  0xb6   : > { %975 = vmatprep.subr.bf16.mxu0 %v1271_v0 }
  0xb9   : > { %977 = vmatpush3.bf16.msra.mxu0 %v976_v2 }
  0xba   : > { %978 = vmatprep.subr.bf16.mxu0 %v1271_v0 }
  0xbd   : > { %980 = vmatpush3.bf16.msra.mxu0 %v979_v10 }
  0xbe   : > { %981 = vmatprep.subr.bf16.mxu0 %v1271_v0 }
  0xc1   : > { %983 = vmatpush3.bf16.msra.mxu0 %v982_v13 }
  0xc2   : > { %984 = vmatprep.subr.bf16.mxu0 %v1271_v0 }
  0xc5   : > { %986 = vmatpush3.bf16.msra.mxu0 %v985_v16 }
 0x17b   : > { %v428_v4 = vpop.f32.mrb[0].mxu0 }
 0x17c   : > { %v429_v5 = vadd.f32 %v752_v3, %v428_v4  ;;  %v844_v6 = vpop.f32.mrb[1].mxu0 }
 0x17e   : > { %1069 = vtanh.f32 %v429_v5 }
 0x188   : > { %v1070_v7 = vpop.eup %1069 }
 0x189   : > { %878 = vmatmul.mubr.f32.vlgmr.msra.gmra.mrb[0].mxu1 %v1070_v7 }
 0x25c   : > { %v522_v18 = vpop.f32.mrb[0].mxu1 }
 0x25d   : > { %v523_v19 = vadd.f32 %v753_v17, %v522_v18  ;;  %v879_v20 = vpop.f32.mrb[1].mxu1 }
 0x25f   : > { %1071 = vtanh.f32 %v523_v19 }
 0x269   : > { %v1072_v21 = vpop.eup %1071 }
 0x26a   : > { %913 = vmatmul.mubr.f32.vlgmr.msra.gmra.mrb[2].mxu0 %v1072_v21 }
 0x33d   : > { %v616_v23 = vpop.f32.mrb[2].mxu0 }
 0x33e   : > { %v617_v0 = vadd.f32 %v754_v22, %v616_v23  ;;  %v914_v24 = vpop.f32.mrb[3].mxu0 }
 0x340   : > { %v620_v25 = vmul.f32 0.5, %v617_v0 }
 0x342   : > { %1073 = vtanh.f32 %v620_v25 }
 0x34c   : > { %v1074_v26 = vpop.eup %1073 }
 0x34d   : > { %v622_v27 = vadd.f32 1.0, %v1074_v26 }
 0x34f   : > { %v623_v28 = vmul.f32 0.5, %v622_v27 }
 0x351   : > { %624 = vst [vmem:[%s337_s20] sm:$0xff] %v623_v28 }
 0x352   : > { %1202 = shalt.err (!%p1199_p4)
}
 0x353   : > { %s1203_s8 = scalar_lea.hbm %s1580_s21, 128  ;;  %s1207_s11 = scalar_lea.hbm %s1631_s7, 256 }
 0x354   : > { %p1204_p0 = scmp.ne.s32.totalorder %s1580_s21, %s1203_s8  ;;  %p1208_p8 = scmp.lt.u32.totalorder %s1580_s21, %s1631_s7 }
 0x355   : > { %p1209_p13 = scmp.lt.u32.totalorder %s1207_s11, %s1203_s8  ;;  %p1211_p10 = scmp.lt.u32.totalorder %s1203_s8, %s1580_s21 }
 0x356   : > { %p1205_p9 = pnand %p1204_p0, %p1469_p5 }
 0x357   : > { %p1210_p6 = por %p1209_p13, %p1208_p8 }
 0x358   : > { %p1206_p11 = pneg %p1205_p9 }
 0x359   : > { %p1212_p3 = por %p1211_p10, %p1210_p6 }
 0x35b   : > { %p1213_p7 = pnand %p1212_p3, %p1206_p11 }
 0x35d   : > { %1216 = shalt.err (!%p1213_p7)
}
 0x35e   : > { %1001 = dma.vmem_to_hbm [thread:$0]  (%p1469_p5), %s1582_s15, 128, %s1580_s21, %s626_s16  }
 0x35f PF: > { %s1651_s20 = sld [smem:[#allocation15_spill]]  ;;  %s651_s29 = sand.u32 1, %s1251_s24  }
 0x360   : > { %p1653_p1 = scmp.ge.s32.totalorder %s1263_s27, 2  ;;  %s652_s12 = scalar_lea.sflag [#allocation4], %s651_s29 }
 0x365   : > { %p1652_p12 = scmp.ne.s32.totalorder %s1651_s20, 0 }
 0x367   : > { %p1018_p2 = pnand %p1653_p1, %p1652_p12 }
 0x369   : > { %1246 = dma.done.wait (!%p1018_p2), %s652_s12, 128  }
 0x36a   : > { %1248 = vsyncadd (!%p1018_p2), %s652_s12, 4294967168  ;;  %p22_p4 = scmp.ge.s32.totalorder %s1455_s22, 4   ;;  %s1654_s24 = smov %s1255_s25 }
 0x36b   : > { %s1655_s25 = smov %s1259_s26  ;;  %s1656_s26 = smov %s1465_s18 }
 0x36c   : > { %s1657_s27 = smov %s1455_s22  ;;  %24 = sbr.rel (!%p22_p4) target bundleno = 7 (0x7), region = 105 }
 0x373   :  { %657 = vsyncpa [#allocation3], 1 }
 0x374   :  { %659 = vsyncpa [#allocation3 + $0x1], 1 }
 0x375   :  { %660 = vsyncpa [#allocation6], 1 }
 0x376   :  { %661 = vsyncpa [#allocation9], 1 }
 0x377   :  { %662 = vsyncpa [#allocation4], 1 }
 0x378   :  { %664 = vsyncpa [#allocation4 + $0x1], 1 }

</bundles_post_ra>
